<compile_context>
chip_gen: v6e
topology: v6e:2x2x1
jax: 0.10.0
libtpu: 0.0.40
codegen_flags: <defaults>
</compile_context>

<pallas_src>
import functools

import numpy as np
import jax
import jax.numpy as jnp
from jax.experimental import pallas as pl
from jax.experimental.pallas import tpu as pltpu

LEAKY_SLOPE = 0.01   # torch.nn.LeakyReLU default
GN_GROUPS = 4
GN_EPS = 1e-5        # torch.nn.GroupNorm default
_LANE = 128


def _round_up(v, m):
    return (v + m - 1) // m * m


def _u2c_stack_kernel(x_ref, w1_ref, b1_ref, gmat_ref, gamma_ref, beta_ref,
                      w2_ref, b2_ref, o_ref, *, inv_n):
    x = x_ref[0].astype(jnp.float32)                 # (T, Cin)
    T = x.shape[0]

    def stack_taps(a):
        # (T, C) f32 -> (T, 3C) bf16 with columns [a[t-1], a[t], a[t+1]] and zero
        # rows at the sequence edges (Conv1d pad=1).  pltpu.roll uses the XLU slot
        # and the edge mask is one VPU select -- no sublane-concat copies.
        rows = jax.lax.broadcasted_iota(jnp.int32, a.shape, 0)
        zero = jnp.float32(0)
        prev = jnp.where(rows > 0, pltpu.roll(a, shift=1, axis=0), zero)
        nxt = jnp.where(rows < T - 1, pltpu.roll(a, shift=T - 1, axis=0), zero)
        return jnp.concatenate([prev.astype(jnp.bfloat16),
                                a.astype(jnp.bfloat16),
                                nxt.astype(jnp.bfloat16)], axis=-1)

    # ---- Conv1d #1 (k=3, pad=1): single fused bf16 MXU matmul, f32 accumulation.
    xs = stack_taps(x)                                               # (T, 3*Cin)
    h = jnp.dot(xs, w1_ref[...], preferred_element_type=jnp.float32)
    h = h + b1_ref[...]                                              # (T, Cmid_p) f32

    # ---- GroupNorm(4, Cmid): per-(sample, group) stats over (T, group-channels).
    # Stats stay in f32; padded channels live in a dummy group and stay exactly 0.
    ch_sum = jnp.sum(h, axis=0, keepdims=True)                       # (1, Cmid_p)
    ch_sq = jnp.sum(h * h, axis=0, keepdims=True)                    # (1, Cmid_p)
    stats = jnp.concatenate([ch_sum, ch_sq], axis=0)                 # (2, Cmid_p)
    grp = jnp.dot(stats, gmat_ref[...], preferred_element_type=jnp.float32)
    mean = grp[0:1, :] * inv_n
    var = jnp.maximum(grp[1:2, :] * inv_n - mean * mean, 0.0)        # biased (torch)
    # Fold the affine into normalization constants: hn = h * s + t  (one VPU pass).
    s = gamma_ref[...] * jax.lax.rsqrt(var + GN_EPS)
    t = beta_ref[...] - mean * s
    hn = h * s + t
    hn = jnp.where(hn > 0, hn, LEAKY_SLOPE * hn)                     # LeakyReLU

    # ---- Conv1d #2 (k=3, pad=1): fused bf16 MXU matmul, lane-dense padded output.
    hs = stack_taps(hn)                                              # (T, 3*Cmid_p)
    y = jnp.dot(hs, w2_ref[...], preferred_element_type=jnp.float32)
    y = y + b2_ref[...]                                              # (T, Cout_p) f32
    o_ref[0] = y.astype(o_ref.dtype)


def comb_sub_stack_only_forward(units_frames, params):
    """units_frames: (B, n_frames, n_unit) -> (B, n_frames, n_hidden)."""
    x = units_frames                    # keep native dtype: no HBM-side upcast
    B, T, Cin = x.shape
    w1, b1 = params["w1"], params["b1"]          # (Cmid, Cin, 3), (Cmid,)
    w2, b2 = params["w2"], params["b2"]          # (Cout, Cmid, 3), (Cout,)
    gamma, beta = params["gamma"], params["beta"]
    Cmid, Cout = w1.shape[0], w2.shape[0]
    assert Cmid % GN_GROUPS == 0

    Cmid_p = _round_up(Cmid, _LANE)     # lane-dense intermediate channels
    Cout_p = _round_up(Cout, _LANE)     # lane-dense (unmasked) output stores

    # Fuse the 3 conv taps into one matmul:  y[t] = [x[t-1],x[t],x[t+1]] @ [W0;W1;W2] + b
    w1s = jnp.transpose(w1, (2, 1, 0)).reshape(3 * Cin, Cmid)          # (3Cin, Cmid)
    w1s = jnp.pad(w1s, ((0, 0), (0, Cmid_p - Cmid))).astype(jnp.bfloat16)
    w2t = jnp.transpose(w2, (2, 1, 0))                                  # (3, Cmid, Cout)
    w2t = jnp.pad(w2t, ((0, 0), (0, Cmid_p - Cmid), (0, Cout_p - Cout)))
    w2s = w2t.reshape(3 * Cmid_p, Cout_p).astype(jnp.bfloat16)          # (3Cmid_p, Cout_p)

    b1r = jnp.pad(b1, (0, Cmid_p - Cmid)).reshape(1, Cmid_p).astype(jnp.float32)
    b2r = jnp.pad(b2, (0, Cout_p - Cout)).reshape(1, Cout_p).astype(jnp.float32)
    gammar = jnp.pad(gamma, (0, Cmid_p - Cmid)).reshape(1, Cmid_p).astype(jnp.float32)
    betar = jnp.pad(beta, (0, Cmid_p - Cmid)).reshape(1, Cmid_p).astype(jnp.float32)

    # Group-indicator matrix; padded channels go to a dummy group (their gamma/beta/
    # weights are 0, so they remain exactly 0 and never pollute real-group stats).
    gid = np.concatenate([np.arange(Cmid) // (Cmid // GN_GROUPS),
                          np.full(Cmid_p - Cmid, GN_GROUPS)])
    gmat = jnp.asarray((gid[:, None] == gid[None, :]).astype(np.float32))  # (Cmid_p, Cmid_p)

    inv_n = 1.0 / float(T * (Cmid // GN_GROUPS))   # uses the REAL channel count
    kernel = functools.partial(_u2c_stack_kernel, inv_n=inv_n)

    out = pl.pallas_call(
        kernel,
        out_shape=jax.ShapeDtypeStruct((B, T, Cout_p), x.dtype),
        grid_spec=pltpu.PrefetchScalarGridSpec(
            num_scalar_prefetch=0,
            grid=(B,),
            in_specs=[
                pl.BlockSpec((1, T, Cin), lambda b: (b, 0, 0)),          # x (native dtype)
                pl.BlockSpec((3 * Cin, Cmid_p), lambda b: (0, 0)),       # w1 stacked (bf16)
                pl.BlockSpec((1, Cmid_p), lambda b: (0, 0)),             # b1
                pl.BlockSpec((Cmid_p, Cmid_p), lambda b: (0, 0)),        # group matrix
                pl.BlockSpec((1, Cmid_p), lambda b: (0, 0)),             # gamma
                pl.BlockSpec((1, Cmid_p), lambda b: (0, 0)),             # beta
                pl.BlockSpec((3 * Cmid_p, Cout_p), lambda b: (0, 0)),    # w2 stacked (bf16)
                pl.BlockSpec((1, Cout_p), lambda b: (0, 0)),             # b2
            ],
            out_specs=pl.BlockSpec((1, T, Cout_p), lambda b: (b, 0, 0)),
        ),
        compiler_params=pltpu.CompilerParams(
            dimension_semantics=("parallel",),          # B across TCs (megacore/v7x)
            vmem_limit_bytes=48 * 1024 * 1024,          # sized to fit v7x's 64 MiB VMEM
        ),
    )(x, w1s, b1r, gmat, gammar, betar, w2s, b2r)

    return out if Cout_p == Cout else out[..., :Cout]


def init_params(key, n_unit, n_hidden, n_mid=32):
    ks = jax.random.split(key, 6)
    w1 = jax.random.normal(ks[0], (n_mid, n_unit, 3), jnp.float32) / jnp.sqrt(3.0 * n_unit)
    b1 = 0.02 * jax.random.normal(ks[1], (n_mid,), jnp.float32)
    gamma = 1.0 + 0.1 * jax.random.normal(ks[2], (n_mid,), jnp.float32)
    beta = 0.1 * jax.random.normal(ks[3], (n_mid,), jnp.float32)
    w2 = jax.random.normal(ks[4], (n_hidden, n_mid, 3), jnp.float32) / jnp.sqrt(3.0 * n_mid)
    b2 = 0.02 * jax.random.normal(ks[5], (n_hidden,), jnp.float32)
    return dict(w1=w1, b1=b1, gamma=gamma, beta=beta, w2=w2, b2=b2)


def ref_forward(x, params, compute_dtype=jnp.bfloat16):
    """Pure-JAX reference of the PyTorch stack (matmul operands in compute_dtype with
    f32 accumulation, mirroring the kernel's MXU precision choice)."""
    def conv1d_k3(a, w, b):                       # a: (B,T,C), w: (O,C,3)
        ap = jnp.pad(a, ((0, 0), (1, 1), (0, 0))).astype(compute_dtype)
        wc = w.astype(compute_dtype)
        T = a.shape[1]
        y = sum(jnp.einsum("btc,oc->bto", ap[:, k:k + T, :], wc[:, :, k],
                           preferred_element_type=jnp.float32) for k in range(3))
        return y + b
    h = conv1d_k3(x.astype(jnp.float32), params["w1"], params["b1"])
    B, T, C = h.shape
    hg = h.reshape(B, T, GN_GROUPS, C // GN_GROUPS)
    mean = hg.mean(axis=(1, 3), keepdims=True)
    var = hg.var(axis=(1, 3), keepdims=True)
    hn = ((hg - mean) / jnp.sqrt(var + GN_EPS)).reshape(B, T, C)
    hn = hn * params["gamma"] + params["beta"]
    hn = jnp.where(hn > 0, hn, LEAKY_SLOPE * hn)
    return conv1d_k3(hn, params["w2"], params["b2"])


if __name__ == "__main__":
    key = jax.random.PRNGKey(0)
    kx, kp = jax.random.split(key)
    # Small shapes consistent with the module's forward (B, n_frames, n_unit).
    B, T, n_unit, n_hidden = 2, 64, 64, 64
    params = init_params(kp, n_unit, n_hidden, n_mid=32)
    units_frames = jax.random.normal(kx, (B, T, n_unit), jnp.float32)

    y = comb_sub_stack_only_forward(units_frames, params)
    y = jax.block_until_ready(y)
    assert y.shape == (B, T, n_hidden)

    y_ref = ref_forward(units_frames, params)
    np.testing.assert_allclose(np.asarray(y, dtype=np.float32),
                               np.asarray(y_ref, dtype=np.float32),
                               rtol=1e-2, atol=1e-2)
    print("KERNEL_OK")
</pallas_src>

<mosaic_0001>
module attributes {stable_mosaic.version = 11 : i64} {
  func.func @_u2c_stack_kernel(%arg0: i32, %arg1: memref<1x64x64xf32, #tpu.memory_space<vmem>>, %arg2: memref<192x128xbf16, #tpu.memory_space<vmem>>, %arg3: memref<1x128xf32, #tpu.memory_space<vmem>>, %arg4: memref<128x128xf32, #tpu.memory_space<vmem>>, %arg5: memref<1x128xf32, #tpu.memory_space<vmem>>, %arg6: memref<1x128xf32, #tpu.memory_space<vmem>>, %arg7: memref<384x128xbf16, #tpu.memory_space<vmem>>, %arg8: memref<1x128xf32, #tpu.memory_space<vmem>>, %arg9: memref<1x64x128xf32, #tpu.memory_space<vmem>>) attributes {dimension_semantics = [#tpu.dimension_semantics<parallel>], iteration_bounds = array<i64: 2>, scalar_prefetch = 0 : i64, scratch_operands = 0 : i64, tpu.core_type = #tpu.core_type<tc>, window_params = [{transform_indices = @transform_0, window_bounds = array<i64: 1, 64, 64>}, {pipeline_mode = #tpu.pipeline_mode<synchronous>, transform_indices = @transform_1, window_bounds = array<i64: 192, 128>}, {pipeline_mode = #tpu.pipeline_mode<synchronous>, transform_indices = @transform_2, window_bounds = array<i64: 1, 128>}, {pipeline_mode = #tpu.pipeline_mode<synchronous>, transform_indices = @transform_3, window_bounds = array<i64: 128, 128>}, {pipeline_mode = #tpu.pipeline_mode<synchronous>, transform_indices = @transform_4, window_bounds = array<i64: 1, 128>}, {pipeline_mode = #tpu.pipeline_mode<synchronous>, transform_indices = @transform_5, window_bounds = array<i64: 1, 128>}, {pipeline_mode = #tpu.pipeline_mode<synchronous>, transform_indices = @transform_6, window_bounds = array<i64: 384, 128>}, {pipeline_mode = #tpu.pipeline_mode<synchronous>, transform_indices = @transform_7, window_bounds = array<i64: 1, 128>}, {transform_indices = @transform_8, window_bounds = array<i64: 1, 64, 128>}]} {
    %c0 = arith.constant 0 : index
    %c0_0 = arith.constant 0 : index
    %c0_1 = arith.constant 0 : index
    %0 = vector.load %arg1[%c0, %c0_0, %c0_1] : memref<1x64x64xf32, #tpu.memory_space<vmem>>, vector<1x64x64xf32>
    %1 = vector.shape_cast %0 : vector<1x64x64xf32> to vector<64x64xf32>
    %2 = tpu.iota {dimensions = array<i32: 0>} : vector<64x64xi32>
    %c0_i32 = arith.constant 0 : i32
    %3 = vector.broadcast %c0_i32 : i32 to vector<64x64xi32>
    %4 = arith.cmpi sgt, %2, %3 : vector<64x64xi32>
    %c1_i32 = arith.constant 1 : i32
    %5 = tpu.dynamic_rotate %1 by %c1_i32 dim 0 : vector<64x64xf32>, i32 -> vector<64x64xf32>
    %cst = arith.constant 0.000000e+00 : f32
    %6 = vector.broadcast %cst : f32 to vector<64x64xf32>
    %7 = arith.select %4, %5, %6 : vector<64x64xi1>, vector<64x64xf32>
    %c63_i32 = arith.constant 63 : i32
    %8 = vector.broadcast %c63_i32 : i32 to vector<64x64xi32>
    %9 = arith.cmpi slt, %2, %8 : vector<64x64xi32>
    %c63_i32_2 = arith.constant 63 : i32
    %10 = tpu.dynamic_rotate %1 by %c63_i32_2 dim 0 : vector<64x64xf32>, i32 -> vector<64x64xf32>
    %cst_3 = arith.constant 0.000000e+00 : f32
    %11 = vector.broadcast %cst_3 : f32 to vector<64x64xf32>
    %12 = arith.select %9, %10, %11 : vector<64x64xi1>, vector<64x64xf32>
    %13 = arith.truncf %7 : vector<64x64xf32> to vector<64x64xbf16>
    %14 = arith.truncf %1 : vector<64x64xf32> to vector<64x64xbf16>
    %15 = arith.truncf %12 : vector<64x64xf32> to vector<64x64xbf16>
    %16 = tpu.concatenate %13, %14, %15 in 1 : vector<64x64xbf16>, vector<64x64xbf16>, vector<64x64xbf16> -> vector<64x192xbf16>
    %c0_4 = arith.constant 0 : index
    %c0_5 = arith.constant 0 : index
    %17 = vector.load %arg2[%c0_4, %c0_5] : memref<192x128xbf16, #tpu.memory_space<vmem>>, vector<192x128xbf16>
    %cst_6 = arith.constant dense<0.000000e+00> : vector<64x128xf32>
    %18 = tpu.matmul %16, %17, %cst_6 {dimension_numbers = #tpu.dot_dimension_numbers<[1], [0], [0], [1], [0, 0, 1, 1], [], []>} : vector<64x192xbf16>, vector<192x128xbf16>, vector<64x128xf32> -> vector<64x128xf32>
    %c0_7 = arith.constant 0 : index
    %c0_8 = arith.constant 0 : index
    %19 = vector.load %arg3[%c0_7, %c0_8] : memref<1x128xf32, #tpu.memory_space<vmem>>, vector<1x128xf32>
    %20 = vector.broadcast %19 : vector<1x128xf32> to vector<64x128xf32>
    %21 = arith.addf %18, %20 : vector<64x128xf32>
    %cst_9 = arith.constant dense<0.000000e+00> : vector<128xf32>
    %22 = vector.multi_reduction <add>, %21, %cst_9 [0] : vector<64x128xf32> to vector<128xf32>
    %23 = vector.shape_cast %22 : vector<128xf32> to vector<1x128xf32>
    %24 = arith.mulf %21, %21 : vector<64x128xf32>
    %cst_10 = arith.constant dense<0.000000e+00> : vector<128xf32>
    %25 = vector.multi_reduction <add>, %24, %cst_10 [0] : vector<64x128xf32> to vector<128xf32>
    %26 = vector.shape_cast %25 : vector<128xf32> to vector<1x128xf32>
    %27 = tpu.concatenate %23, %26 in 0 : vector<1x128xf32>, vector<1x128xf32> -> vector<2x128xf32>
    %c0_11 = arith.constant 0 : index
    %c0_12 = arith.constant 0 : index
    %28 = vector.load %arg4[%c0_11, %c0_12] : memref<128x128xf32, #tpu.memory_space<vmem>>, vector<128x128xf32>
    %cst_13 = arith.constant dense<0.000000e+00> : vector<2x128xf32>
    %29 = tpu.matmul %27, %28, %cst_13 {dimension_numbers = #tpu.dot_dimension_numbers<[1], [0], [0], [1], [0, 0, 1, 1], [], []>} : vector<2x128xf32>, vector<128x128xf32>, vector<2x128xf32> -> vector<2x128xf32>
    %30 = vector.extract_strided_slice %29 {offsets = [0, 0], sizes = [1, 128], strides = [1, 1]} : vector<2x128xf32> to vector<1x128xf32>
    %cst_14 = arith.constant 0.001953125 : f32
    %31 = vector.broadcast %cst_14 : f32 to vector<1x128xf32>
    %32 = arith.mulf %30, %31 : vector<1x128xf32>
    %33 = vector.extract_strided_slice %29 {offsets = [1, 0], sizes = [1, 128], strides = [1, 1]} : vector<2x128xf32> to vector<1x128xf32>
    %cst_15 = arith.constant 0.001953125 : f32
    %34 = vector.broadcast %cst_15 : f32 to vector<1x128xf32>
    %35 = arith.mulf %33, %34 : vector<1x128xf32>
    %36 = arith.mulf %32, %32 : vector<1x128xf32>
    %37 = arith.subf %35, %36 : vector<1x128xf32>
    %cst_16 = arith.constant 0.000000e+00 : f32
    %38 = vector.broadcast %cst_16 : f32 to vector<1x128xf32>
    %39 = arith.maximumf %37, %38 : vector<1x128xf32>
    %c0_17 = arith.constant 0 : index
    %c0_18 = arith.constant 0 : index
    %40 = vector.load %arg5[%c0_17, %c0_18] : memref<1x128xf32, #tpu.memory_space<vmem>>, vector<1x128xf32>
    %cst_19 = arith.constant 9.99999974E-6 : f32
    %41 = vector.broadcast %cst_19 : f32 to vector<1x128xf32>
    %42 = arith.addf %39, %41 : vector<1x128xf32>
    %43 = math.rsqrt %42 : vector<1x128xf32>
    %44 = arith.mulf %40, %43 : vector<1x128xf32>
    %c0_20 = arith.constant 0 : index
    %c0_21 = arith.constant 0 : index
    %45 = vector.load %arg6[%c0_20, %c0_21] : memref<1x128xf32, #tpu.memory_space<vmem>>, vector<1x128xf32>
    %46 = arith.mulf %32, %44 : vector<1x128xf32>
    %47 = arith.subf %45, %46 : vector<1x128xf32>
    %48 = vector.broadcast %44 : vector<1x128xf32> to vector<64x128xf32>
    %49 = arith.mulf %21, %48 : vector<64x128xf32>
    %50 = vector.broadcast %47 : vector<1x128xf32> to vector<64x128xf32>
    %51 = arith.addf %49, %50 : vector<64x128xf32>
    %cst_22 = arith.constant 0.000000e+00 : f32
    %52 = vector.broadcast %cst_22 : f32 to vector<64x128xf32>
    %53 = arith.cmpf ogt, %51, %52 : vector<64x128xf32>
    %cst_23 = arith.constant 0.00999999977 : f32
    %54 = vector.broadcast %cst_23 : f32 to vector<64x128xf32>
    %55 = arith.mulf %54, %51 : vector<64x128xf32>
    %56 = arith.select %53, %51, %55 : vector<64x128xi1>, vector<64x128xf32>
    %57 = tpu.iota {dimensions = array<i32: 0>} : vector<64x128xi32>
    %c0_i32_24 = arith.constant 0 : i32
    %58 = vector.broadcast %c0_i32_24 : i32 to vector<64x128xi32>
    %59 = arith.cmpi sgt, %57, %58 : vector<64x128xi32>
    %c1_i32_25 = arith.constant 1 : i32
    %60 = tpu.dynamic_rotate %56 by %c1_i32_25 dim 0 : vector<64x128xf32>, i32 -> vector<64x128xf32>
    %cst_26 = arith.constant 0.000000e+00 : f32
    %61 = vector.broadcast %cst_26 : f32 to vector<64x128xf32>
    %62 = arith.select %59, %60, %61 : vector<64x128xi1>, vector<64x128xf32>
    %c63_i32_27 = arith.constant 63 : i32
    %63 = vector.broadcast %c63_i32_27 : i32 to vector<64x128xi32>
    %64 = arith.cmpi slt, %57, %63 : vector<64x128xi32>
    %c63_i32_28 = arith.constant 63 : i32
    %65 = tpu.dynamic_rotate %56 by %c63_i32_28 dim 0 : vector<64x128xf32>, i32 -> vector<64x128xf32>
    %cst_29 = arith.constant 0.000000e+00 : f32
    %66 = vector.broadcast %cst_29 : f32 to vector<64x128xf32>
    %67 = arith.select %64, %65, %66 : vector<64x128xi1>, vector<64x128xf32>
    %68 = arith.truncf %62 : vector<64x128xf32> to vector<64x128xbf16>
    %69 = arith.truncf %56 : vector<64x128xf32> to vector<64x128xbf16>
    %70 = arith.truncf %67 : vector<64x128xf32> to vector<64x128xbf16>
    %71 = tpu.concatenate %68, %69, %70 in 1 : vector<64x128xbf16>, vector<64x128xbf16>, vector<64x128xbf16> -> vector<64x384xbf16>
    %c0_30 = arith.constant 0 : index
    %c0_31 = arith.constant 0 : index
    %72 = vector.load %arg7[%c0_30, %c0_31] : memref<384x128xbf16, #tpu.memory_space<vmem>>, vector<384x128xbf16>
    %cst_32 = arith.constant dense<0.000000e+00> : vector<64x128xf32>
    %73 = tpu.matmul %71, %72, %cst_32 {dimension_numbers = #tpu.dot_dimension_numbers<[1], [0], [0], [1], [0, 0, 1, 1], [], []>} : vector<64x384xbf16>, vector<384x128xbf16>, vector<64x128xf32> -> vector<64x128xf32>
    %c0_33 = arith.constant 0 : index
    %c0_34 = arith.constant 0 : index
    %74 = vector.load %arg8[%c0_33, %c0_34] : memref<1x128xf32, #tpu.memory_space<vmem>>, vector<1x128xf32>
    %75 = vector.broadcast %74 : vector<1x128xf32> to vector<64x128xf32>
    %76 = arith.addf %73, %75 : vector<64x128xf32>
    %c0_35 = arith.constant 0 : index
    %c0_36 = arith.constant 0 : index
    %c0_37 = arith.constant 0 : index
    %77 = vector.load %arg9[%c0_35, %c0_36, %c0_37] : memref<1x64x128xf32, #tpu.memory_space<vmem>>, vector<1x64x128xf32>
    %78 = vector.shape_cast %77 : vector<1x64x128xf32> to vector<64x128xf32>
    %79 = vector.shape_cast %76 : vector<64x128xf32> to vector<1x64x128xf32>
    tpu.vector_store %arg9[%c0_35, %c0_36, %c0_37], %79 {strides = array<i32>} : memref<1x64x128xf32, #tpu.memory_space<vmem>>, vector<1x64x128xf32>,
    return
  }
  func.func @transform_0(%arg0: i32) -> (i32, i32, i32) {
    %c0_i32 = arith.constant 0 : i32
    %c0_i32_0 = arith.constant 0 : i32
    %c0_i32_1 = arith.constant 0 : i32
    return %arg0, %c0_i32, %c0_i32_0 : i32, i32, i32
  }
  func.func @transform_1(%arg0: i32) -> (i32, i32) {
    %c0_i32 = arith.constant 0 : i32
    %c0_i32_0 = arith.constant 0 : i32
    %c0_i32_1 = arith.constant 0 : i32
    return %c0_i32, %c0_i32_0 : i32, i32
  }
  func.func @transform_2(%arg0: i32) -> (i32, i32) {
    %c0_i32 = arith.constant 0 : i32
    %c0_i32_0 = arith.constant 0 : i32
    %c0_i32_1 = arith.constant 0 : i32
    return %c0_i32, %c0_i32_0 : i32, i32
  }
  func.func @transform_3(%arg0: i32) -> (i32, i32) {
    %c0_i32 = arith.constant 0 : i32
    %c0_i32_0 = arith.constant 0 : i32
    %c0_i32_1 = arith.constant 0 : i32
    return %c0_i32, %c0_i32_0 : i32, i32
  }
  func.func @transform_4(%arg0: i32) -> (i32, i32) {
    %c0_i32 = arith.constant 0 : i32
    %c0_i32_0 = arith.constant 0 : i32
    %c0_i32_1 = arith.constant 0 : i32
    return %c0_i32, %c0_i32_0 : i32, i32
  }
  func.func @transform_5(%arg0: i32) -> (i32, i32) {
    %c0_i32 = arith.constant 0 : i32
    %c0_i32_0 = arith.constant 0 : i32
    %c0_i32_1 = arith.constant 0 : i32
    return %c0_i32, %c0_i32_0 : i32, i32
  }
  func.func @transform_6(%arg0: i32) -> (i32, i32) {
    %c0_i32 = arith.constant 0 : i32
    %c0_i32_0 = arith.constant 0 : i32
    %c0_i32_1 = arith.constant 0 : i32
    return %c0_i32, %c0_i32_0 : i32, i32
  }
  func.func @transform_7(%arg0: i32) -> (i32, i32) {
    %c0_i32 = arith.constant 0 : i32
    %c0_i32_0 = arith.constant 0 : i32
    %c0_i32_1 = arith.constant 0 : i32
    return %c0_i32, %c0_i32_0 : i32, i32
  }
  func.func @transform_8(%arg0: i32) -> (i32, i32, i32) {
    %c0_i32 = arith.constant 0 : i32
    %c0_i32_0 = arith.constant 0 : i32
    %c0_i32_1 = arith.constant 0 : i32
    return %arg0, %c0_i32, %c0_i32_0 : i32, i32, i32
  }
}

</mosaic_0001>

<bundles_post_ra>
// kernel: tpu_custom_call.1
= control target key start
LH: loop header
LB: loop body
LE: loop exit
PB: predicated region body
PF: predicated region fallthrough
CT: control target
= control target key end

     0   :  { %s2373_s0 = inlined_call_operand.hbm [shape: f32[2,64,64], index: 0, kind: input, shape index: {}]   ;;  %s2374_s1 = inlined_call_operand.hbm [shape: bf16[192,128], index: 1, kind: input, shape index: {}]   ;;  %s2375_s2 = inlined_call_operand.vmem [shape: f32[1,128], index: 2, kind: input, shape index: {}]   ;;  %s2376_s3 = inlined_call_operand.hbm [shape: f32[128,128], index: 3, kind: input, shape index: {}]   ;;  %s2377_s4 = inlined_call_operand.vmem [shape: f32[1,128], index: 4, kind: input, shape index: {}]   ;;  %s2378_s5 = inlined_call_operand.vmem [shape: f32[1,128], index: 5, kind: input, shape index: {}]   ;;  %s2379_s6 = inlined_call_operand.hbm [shape: bf16[384,128], index: 6, kind: input, shape index: {}]   ;;  %s2380_s7 = inlined_call_operand.vmem [shape: f32[1,128], index: 7, kind: input, shape index: {}]   ;;  %s2381_s8 = inlined_call_operand.hbm [shape: f32[2,64,128], index: 8, kind: output, shape index: {}]  }
   0x1   :  { %2388 = sst [smem:[#allocation15_spill]] %s2374_s1 }
   0x2   :  { %2389 = sst [smem:[#allocation16_spill]] %s2376_s3 }
   0x3   :  { %13 = vsyncpa [#allocation3], 0 }
   0x4   :  { %15 = vsyncpa [#allocation3 + $0x1], 0 }
   0x5   :  { %16 = vsyncpa [#allocation6], 0 }
   0x6   :  { %17 = vsyncpa [#allocation9], 0 }
   0x7   :  { %18 = vsyncpa [#allocation4], 0 }
   0x8   :  { %20 = vsyncpa [#allocation4 + $0x1], 0  ;;  %s1958_s27 = smov 0   ;;  %s1960_s28 = smov 0  }
   0x9   :  { %s1962_s29 = smov 0   ;;  %s1964_s30 = smov 0  }
   0xa LB: > { %s1979_s9 = sadd.s32 4294967295, %s1894_s30   ;;  %s1391_s10 = sadd.s32 4294967294, %s1894_s30   ;;  %s1894_s30 = sphi %s1964_s30, %s2412_s30   ;;  %s1890_s29 = sphi %s1962_s29, %s2411_s29   ;;  %s1886_s28 = sphi %s1960_s28, %s2410_s28   ;;  %s1882_s27 = sphi %s1958_s27, %s2409_s27  }
   0xb   : > { %p46_p0 = scmp.ne.s32.totalorder %s1886_s28, %s1882_s27  ;;  %p2384_p1 = scmp.eq.s32.totalorder %s1979_s9, 0 }
   0xc   : > { %p217_p2 = scmp.eq.s32.totalorder %s1979_s9, 1  ;;  %p223_p3 = scmp.eq.s32.totalorder %s1391_s10, 1 }
   0xd   : > { %p1988_p4 = por %p2384_p1, %p46_p0  ;;  %p1392_p5 = scmp.ge.s32.totalorder %s1894_s30, 1 }
   0xe   : > { %p1993_p6 = por %p223_p3, %p46_p0  ;;  %p230_p7 = scmp.lt.s32.totalorder %s1894_s30, 3 }
   0xf   : > { %s2390_s11 = scalar_select %p1988_p4, 1, 0 }
  0x10   : > { %s2391_s12 = scalar_select %p1993_p6, 1, 0 }
  0x11   : > { %p1998_p8 = pnand %p1392_p5, %p230_p7  ;;  %s1896_s14 = smov [#allocation5]  }
  0x12   : > { %s242_s15 = sshll.u32 %s1896_s14, 4  ;;  %s1897_s17 = smov [#allocation7]   ;;  %s243_s15 = int_to_ptr.vmem [resolvable:$true] %s242_s15 }
  0x13   : > { %s2392_s13 = scalar_select %p1998_p8, 1, 0 }
  0x14   : > { %p1605_p9 = pneg %p1998_p8  ;;  %s258_s18 = sshll.u32 %s1897_s17, 4  ;;  %s259_s18 = int_to_ptr.vmem [resolvable:$true] %s258_s18 }
  0x15   : > { %s1727_s19 = scalar_lea.vmem %s243_s15, 1536  ;;  %p1735_p5 = scmp.lt.s32.totalorder %s243_s15, %s243_s15 }
  0x16   : > { %p2007_p11 = pnand %p1605_p9, %p2384_p1  ;;  %p1728_p13 = scmp.ne.s32.totalorder %s243_s15, %s1727_s19 }
  0x17   : > { %p1736_p7 = scmp.lt.s32.totalorder %s1727_s19, %s1727_s19 }
  0x18   : > { %p1718_p12 = pneg %p2007_p11 }
  0x19   : > { %p1737_p10 = por %p1736_p7, %p1735_p5 }
  0x1a   : > { %p1730_p0 = pnand %p1728_p13, %p1718_p12 }
  0x1c   : > { %p1731_p3 = pneg %p1730_p0 }
  0x1e   : > { %p1738_p9 = pnand %p1737_p10, %p1731_p3 }
  0x20   : > { %1741 = shalt.err (!%p1738_p9)
}
  0x21   : > { %s1898_s20 = smov 64   ;;  %s1899_s21 = smov 4  }
  0x22   : > { %s2394_s1 = sld [smem:[#allocation15_spill]]  ;;  %s1753_s24 = scalar_lea.vmem %s259_s18, 2048 }
  0x23   : > { %p1754_p13 = scmp.ne.s32.totalorder %s259_s18, %s1753_s24  ;;  %p1761_p10 = scmp.lt.s32.totalorder %s259_s18, %s259_s18 }
  0x24   : > { %p1762_p3 = scmp.lt.s32.totalorder %s1753_s24, %s1753_s24 }
  0x25   : > { %p1756_p0 = pnand %p1754_p13, %p1718_p12 }
  0x26   : > { %p1763_p7 = por %p1762_p3, %p1761_p10 }
  0x27   : > { %p1757_p5 = pneg %p1756_p0 }
  0x28   : > { %1608 = dma.hbm_to_vmem [thread:$0]  (!%p2007_p11), %s2394_s1, 1536, %s243_s15, [#allocation6], %s1898_s20, %s1898_s20, %s1899_s21  }
  0x29   : > { %p1764_p9 = pnand %p1763_p7, %p1757_p5 }
  0x2b   : > { %1767 = shalt.err (!%p1764_p9)
}
  0x2c   : > { %s2382_s25 = smov 128   ;;  %s2383_s26 = smov 8  }
  0x2d   : > { %s2395_s3 = sld [smem:[#allocation16_spill]]  ;;  %s1902_s15 = smov [#allocation8]  }
  0x2e   : > { %s277_s17 = sshll.u32 %s1902_s15, 4  ;;  %s2036_s19 = sadd.s32 1, %s1894_s30   ;;  %s278_s17 = int_to_ptr.vmem [resolvable:$true] %s277_s17 }
  0x2f   : > { %s1779_s22 = scalar_lea.vmem %s278_s17, 3072  ;;  %p1787_p10 = scmp.lt.s32.totalorder %s278_s17, %s278_s17 }
  0x30   : > { %p1780_p13 = scmp.ne.s32.totalorder %s278_s17, %s1779_s22  ;;  %p1788_p3 = scmp.lt.s32.totalorder %s1779_s22, %s1779_s22 }
  0x32   : > { %p1782_p0 = pnand %p1780_p13, %p1718_p12  ;;  %p1789_p7 = por %p1788_p3, %p1787_p10 }
  0x33   : > { %1611 = dma.hbm_to_vmem [thread:$0]  (!%p2007_p11), %s2395_s3, 2048, %s259_s18, [#allocation6], %s2382_s25, %s2382_s25, %s2383_s26  }
  0x34   : > { %p1783_p5 = pneg %p1782_p0 }
  0x36   : > { %p1790_p9 = pnand %p1789_p7, %p1783_p5 }
  0x38   : > { %1793 = shalt.err (!%p1790_p9)
}
  0x39   : > { %1614 = dma.hbm_to_vmem [thread:$0]  (!%p2007_p11), %s2379_s6, 3072, %s278_s17, [#allocation9], %s1898_s20, %s1898_s20, %s1899_s21  }
  0x3a   : > { %s30_s24 = ssub.s32 %s1894_s30, %s2036_s19  ;;  %s33_s16 = sadd.s32 1, %s1890_s29 }
  0x3b   : > { %p31_p12 = scmp.eq.s32.totalorder %s30_s24, 0  ;;  %p40_p13 = scmp.ne.s32.totalorder %s1890_s29, %s1886_s28 }
  0x3c   : > { %p41_p0 = scmp.eq.s32.totalorder %s1894_s30, 0  ;;  %p1626_p5 = scmp.lt.s32.totalorder %s1894_s30, 2 }
  0x3d   : > { %s2057_s10 = scalar_select %p31_p12, %s1890_s29, %s33_s16  }
  0x3e   : > { %p42_p10 = por %p41_p0, %p40_p13  ;;  %p2061_p3 = por %p217_p2, %p40_p13 }
  0x3f   : > { %s294_s15 = sand.u32 1, %s1890_s29   ;;  %s1459_s22 = sshll.u32 %s1894_s30, 10 }
  0x40   : > { %s2396_s14 = scalar_select %p2061_p3, 1, 0 }
  0x41   : > { %s1397_s18 = sshll.u32 %s294_s15, 6  ;;  %s2070_s20 = scalar_lea.hbm %s2373_s0, %s1459_s22 }
  0x42   : > { %s298_s21 = scalar_lea.vmem [#allocation2], %s1397_s18  ;;  %p2072_p11 = pnand %p1626_p5, %p42_p10 }
  0x43   : > { %s305_s17 = sshll.u32 %s298_s21, 4  ;;  %s2078_s16 = scalar_lea.sflag [#allocation3], %s294_s15  ;;  %s2076_s17 = int_to_ptr.vmem [resolvable:$true] %s305_s17 }
  0x44   : > { %s1794_s26 = scalar_lea.hbm %s2070_s20, 1024  ;;  %p1796_p7 = pneg %p2072_p11 }
  0x45   : > { %p1795_p2 = scmp.ne.s32.totalorder %s2070_s20, %s1794_s26  ;;  %s1799_s18 = scalar_lea.hbm %s2373_s0, 2048 }
  0x46   : > { %p1800_p13 = scmp.lt.s32.totalorder %s2070_s20, %s2373_s0  ;;  %p1801_p0 = scmp.lt.s32.totalorder %s1799_s18, %s1794_s26 }
  0x47   : > { %p1797_p9 = pnand %p1796_p7, %p1795_p2 }
  0x48   : > { %p1802_p5 = por %p1801_p0, %p1800_p13 }
  0x49   : > { %p1798_p12 = pneg %p1797_p9 }
  0x4b   : > { %p1803_p10 = pnand %p1802_p5, %p1798_p12 }
  0x4d   : > { %1806 = shalt.err (!%p1803_p10)
}
  0x4e   : > { %s1807_s15 = scalar_lea.vmem %s2076_s17, 1024  ;;  %s1903_s1 = smov [#allocation2]  }
  0x4f   : > { %p1808_p1 = scmp.ne.s32.totalorder %s2076_s17, %s1807_s15  ;;  %s1812_s3 = sshll.u32 %s1903_s1, 4  ;;  %s1813_s3 = int_to_ptr.vmem [resolvable:$false] %s1812_s3 }
  0x50   : > { %s1814_s25 = scalar_lea.vmem %s1813_s3, 2048  ;;  %p1815_p9 = scmp.lt.s32.totalorder %s2076_s17, %s1813_s3 }
  0x51   : > { %p1810_p6 = pnand %p1808_p1, %p1796_p7  ;;  %p1816_p3 = scmp.lt.s32.totalorder %s1814_s25, %s1807_s15 }
  0x53   : > { %p1811_p2 = pneg %p1810_p6  ;;  %p1817_p4 = por %p1816_p3, %p1815_p9 }
  0x55   : > { %p1818_p8 = pnand %p1817_p4, %p1811_p2 }
  0x57   : > { %1821 = shalt.err (!%p1818_p8)
}
  0x58   : > { %s2398_s26 = smov 8   ;;  %s2399_s22 = smov 128  }
  0x59   : > { %1618 = dma.hbm_to_vmem [thread:$0]  (!%p2072_p11), %s2070_s20, 1024, %s2076_s17, %s2078_s16, %s2399_s22, %s2399_s22, %s2398_s26  }
  0x5a   : > { %p2400_p1 = scmp.ne.s32.totalorder %s2392_s13, 0 }
  0x5b   : > { %s2105_s1 = sand.u32 (!%p2400_p1), 1, %s1886_s28   ;;  %p2401_p4 = scmp.ne.s32.totalorder (!%p2400_p1), %s2390_s11, 0 }
  0x5c   : > { %317 = sbr.rel (%p2400_p1) target bundleno = 951 (0x3b7), region = 52  ;;  %s1401_s3 = sshll.u32 (!%p2400_p1), %s2105_s1, 6 }
  0x5d   : > { %s320_s18 = scalar_lea.sflag (!%p2400_p1), [#allocation3], %s2105_s1  ;;  %s323_s24 = scalar_lea.vmem (!%p2400_p1), [#allocation2], %s1401_s3 }
  0x61   : > { %1865 = dma.done.wait (%p2401_p4), %s320_s18, 1024  }
  0x62   : > { %1867 = vsyncadd (%p2401_p4), %s320_s18, 4294966272  ;;  %p2402_p6 = scmp.eq.s32.totalorder %s1979_s9, 0 }
  0x64   : > { %1869 = dma.done.wait (%p2402_p6), [#allocation6], 3584   ;;  %p2403_p8 = pmov %p2402_p6 }
  0x65   : > { %p2404_p3 = pmov %p2402_p6 }
  0x66   : > { %1871 = vsyncadd (%p2403_p8), [#allocation6], 4294963712 }
  0x67   : > { %1873 = dma.done.wait (%p2404_p3), [#allocation9], 3072   ;;  %p2405_p11 = pmov %p2404_p3 }
  0x68   : > { %v377_v0 = vlaneseq  ;;  %v1904_v1 = vmov 0   ;;  %v2126_v3 = vld [vmem:[%s323_s24] sm:$0xff]  ;;  %v370_v4 = vld [vmem:[%s323_s24 + $0x8] sm:$0xff]  ;;  %v371_v5 = vld [vmem:[%s323_s24 + $0x10] sm:$0xff]  ;;  %vm476_vm1 = vcmask 523264   ;;  %s1905_s11 = smov 64  }
  0x69   : > { %1875 = vsyncadd (%p2405_p11), [#allocation9], 4294964224  ;;  %608 = vmatprep.subr.bf16.mxu0 %v1904_v1  ;;  %v395_v6 = vrot.slane %v370_v4, 7  ;;  %v428_v7 = vrot.slane %v370_v4, 1  ;;  %v456_v8 = vpack.c.bf16 %v370_v4, %v2126_v3  ;;  %v394_v9 = vrot.slane %v2126_v3, 7  ;;  %v372_v10 = vld [vmem:[%s323_s24 + $0x18] sm:$0xff] }
  0x6a   : > { %v2124_v2 = vshrl.u32 %v377_v0, 7  ;;  %v373_v11 = vld [vmem:[%s323_s24 + $0x20] sm:$0xff]  ;;  %v374_v12 = vld [vmem:[%s323_s24 + $0x28] sm:$0xff]  ;;  %v427_v13 = vrot.slane %v2126_v3, 1  ;;  %v396_v14 = vrot.slane %v371_v5, 7  ;;  %v397_v15 = vrot.slane %v372_v10, 7 }
  0x6b   : > { %v430_v16 = vrot.slane %v372_v10, 1  ;;  %v375_v17 = vld [vmem:[%s323_s24 + $0x30] sm:$0xff]  ;;  %v376_v18 = vld [vmem:[%s323_s24 + $0x38] sm:$0xff]  ;;  %468 = vrot.lane.b32.xlu0 %v456_v8, %s1905_s11  ;;  %v457_v19 = vpack.c.bf16 %v372_v10, %v371_v5  ;;  %v399_v20 = vrot.slane %v374_v12, 7  ;;  %v432_v21 = vrot.slane %v374_v12, 1  ;;  %v1680_v49 = vld [vmem:[#allocation5 + $0x28] sm:$0xff]  }
  0x6c   : > { %vm435_vm0 = vcmp.lt.s32.totalorder %v2124_v2, 7  ;;  %vm386_vm2 = vcmp.gt.s32.totalorder %v2124_v2, 0  ;;  %vm402_vm3 = vcmp.lt.s32.totalorder %v2124_v2, 1  ;;  %v458_v22 = vpack.c.bf16 %v374_v12, %v373_v11  ;;  %v1678_v27 = vld [vmem:[#allocation5 + $0x38] sm:$0xff]   ;;  %v1679_v32 = vld [vmem:[#allocation5 + $0x30] sm:$0xff]   ;;  %v1681_v60 = vld [vmem:[#allocation5 + $0x20] sm:$0xff]  }
  0x6d   : > { %v398_v23 = vrot.slane %v373_v11, 7  ;;  %v431_v24 = vrot.slane %v373_v11, 1  ;;  %v400_v25 = vrot.slane %v375_v17, 7  ;;  %v401_v26 = vrot.slane %v376_v18, 7  ;;  %609 = vmatpush1.bf16.msra.mxu0 %v1678_v27  ;;  %v1682_v62 = vld [vmem:[#allocation5 + $0x18] sm:$0xff]   ;;  %v1683_v63 = vld [vmem:[#allocation5 + $0x10] sm:$0xff]  }
  0x6e   : > { %472 = vrot.lane.b32.xlu1 %v458_v22, %s1905_s11  ;;  %v433_v28 = vrot.slane %v375_v17, 1  ;;  %v434_v29 = vrot.slane %v376_v18, 1  ;;  %v459_v30 = vpack.c.bf16 %v376_v18, %v375_v17  ;;  %v442_v31 = vsel %vm435_vm0, %v427_v13, %v428_v7  ;;  %610 = vmatprep.subr.bf16.mxu0 %v1904_v1  ;;  %v1684_v0 = vld [vmem:[#allocation5 + $0x8] sm:$0xff]   ;;  %v1685_v3 = vld [vmem:[#allocation5] sm:$0xff]   ;;  %v1686_v4 = vld [vmem:[#allocation5 + $0x58] sm:$0xff]   ;;  %s2313_s26 = scalar_lea.vmem [#allocation10], %s1401_s3 }
  0x6f   : > { %v429_v33 = vrot.slane %v371_v5, 1  ;;  %v2140_v34 = vsel %vm402_vm3, %v394_v9, %v395_v6  ;;  %v410_v35 = vsel %vm402_vm3, %v401_v26, %v394_v9  ;;  %v2146_v36 = vsel %vm435_vm0, %v430_v16, %v431_v24  ;;  %470 = vrot.lane.b32.xlu0 %v457_v19, %s1905_s11  ;;  %v1687_v5 = vld [vmem:[#allocation5 + $0x50] sm:$0xff]   ;;  %v722_v18 = vld [vmem:[#allocation7 + $0x68] sm:$0xff]  ;;  %v721_v19 = vld [vmem:[#allocation7 + $0x60] sm:$0xff]  ;;  %s1289_s22 = sshll.u32 %s2313_s26, 4  ;;  %s1460_s3 = sshll.u32 %s1979_s9, 10  ;;  %s2323_s22 = int_to_ptr.vmem [resolvable:$true] %s1289_s22 }
  0x70   : > { %v411_v37 = vsel %vm386_vm2, %v410_v35, 0.0  ;;  %v2154_v38 = vsel %vm402_vm3, %v396_v14, %v397_v15  ;;  %v408_v39 = vsel %vm402_vm3, %v395_v6, %v396_v14  ;;  %v437_v40 = vsel %vm435_vm0, %v432_v21, %v433_v28  ;;  %v1688_v6 = vld [vmem:[#allocation5 + $0x48] sm:$0xff]   ;;  %v723_v17 = vld [vmem:[#allocation7 + $0x70] sm:$0xff]  ;;  %v713_v27 = vld [vmem:[#allocation7 + $0x20] sm:$0xff]  ;;  %s1276_s13 = scalar_lea.sflag [#allocation4], %s2105_s1  ;;  %s1822_s20 = scalar_lea.vmem %s2323_s22, 1024 }
  0x71   : > { %v441_v41 = vsel %vm435_vm0, %v428_v7, %v429_v33  ;;  %v452_v42 = vpack.c.bf16 %v2140_v34, %v411_v37  ;;  %v440_v43 = vsel %vm435_vm0, %v429_v33, %v430_v16  ;;  %v453_v44 = vpack.c.bf16 %v2154_v38, %v408_v39  ;;  %611 = vmatpush1.bf16.msra.mxu0 %v1679_v32  ;;  %v1689_v7 = vld [vmem:[#allocation5 + $0x40] sm:$0xff]   ;;  %v724_v16 = vld [vmem:[#allocation7 + $0x78] sm:$0xff]  ;;  %v718_v22 = vld [vmem:[#allocation7 + $0x48] sm:$0xff]  ;;  %p1823_p7 = scmp.ne.s32.totalorder %s2323_s22, %s1822_s20  ;;  %p2406_p12 = scmp.ne.s32.totalorder %s2396_s14, 0 }
  0x72   : > { %474 = vrot.lane.b32.xlu1 %v459_v30, %s1905_s11  ;;  %v460_v45 = vpack.c.bf16 %v441_v41, %v442_v31  ;;  %v461_v46 = vpack.c.bf16 %v2146_v36, %v440_v43  ;;  %v438_v47 = vsel %vm435_vm0, %v431_v24, %v432_v21  ;;  %v405_v48 = vsel %vm402_vm3, %v398_v23, %v399_v20  ;;  %v719_v21 = vld [vmem:[#allocation7 + $0x50] sm:$0xff]  ;;  %v716_v24 = vld [vmem:[#allocation7 + $0x38] sm:$0xff]  ;;  %v710_v30 = vld [vmem:[#allocation7 + $0x8] sm:$0xff]  ;;  %s2329_s11 = scalar_lea.hbm %s2381_s8, %s1460_s3  ;;  %s1910_s9 = smov [#allocation10]  }
  0x73   : > { %v462_v50 = vpack.c.bf16 %v437_v40, %v438_v47  ;;  %v406_v51 = vsel %vm402_vm3, %v397_v15, %v398_v23  ;;  %v2175_v52 = vadd.s32 56, %v2124_v2  ;;  %v436_v53 = vsel %vm435_vm0, %v433_v28, %v434_v29  ;;  %612 = vmatprep.subr.bf16.mxu0 %v1904_v1  ;;  %v717_v23 = vld [vmem:[#allocation7 + $0x40] sm:$0xff]  ;;  %v712_v28 = vld [vmem:[#allocation7 + $0x18] sm:$0xff]  ;;  %p1824_p13 = pnand %p1823_p7, %p2406_p12  ;;  %s1826_s17 = sshll.u32 %s1910_s9, 4  ;;  %s1827_s17 = int_to_ptr.vmem [resolvable:$false] %s1826_s17 }
  0x74   : > { %1419 = vmatprep.mubr.msk.bf16.mxu0 %vm476_vm1, %v460_v45  ;;  %v454_v54 = vpack.c.bf16 %v405_v48, %v406_v51  ;;  %v443_v55 = vsel %vm435_vm0, %v434_v29, %v427_v13  ;;  %v403_v56 = vsel %vm402_vm3, %v400_v25, %v401_v26  ;;  %v404_v57 = vsel %vm402_vm3, %v399_v20, %v400_v25  ;;  %v720_v20 = vld [vmem:[#allocation7 + $0x58] sm:$0xff]  ;;  %v715_v25 = vld [vmem:[#allocation7 + $0x30] sm:$0xff]  ;;  %v714_v26 = vld [vmem:[#allocation7 + $0x28] sm:$0xff]  ;;  %s1828_s16 = scalar_lea.vmem %s1827_s17, 2048  ;;  %p1829_p5 = scmp.lt.s32.totalorder %s2323_s22, %s1827_s17 }
  0x75   : > { %vm426_vm4 = vcmp.lt.s32.totalorder %v2175_v52, 63  ;;  %v455_v59 = vpack.c.bf16 %v403_v56, %v404_v57  ;;  %613 = vmatpush1.bf16.msra.mxu0 %v1680_v49  ;;  %v1906_v15 = vmov 0.0   ;;  %vm1907_vm5 = vmmov 0   ;;  %v711_v29 = vld [vmem:[#allocation7 + $0x10] sm:$0xff]  ;;  %v709_v31 = vld [vmem:[#allocation7] sm:$0xff]  ;;  %p1825_p0 = pneg %p1824_p13  ;;  %p1830_p10 = scmp.lt.s32.totalorder %s1828_s16, %s1822_s20 }
  0x76   : > { %v451_v58 = vsel %vm426_vm4, %v443_v55, 0.0  ;;  %614 = vmatprep.subr.bf16.mxu0 %v1904_v1  ;;  %1530 = vmatprep.subr.mxu1 %v1906_v15  ;;  %v1406_v38 = vld [vmem:[%s2375_s2] ss:$0 sm:$0xff]  ;;  %vm707_vm6 = vcmask 1040384   ;;  %vm1909_vm13 = vmmov 1  }
  0x77   : > { %v463_v61 = vpack.c.bf16 %v451_v58, %v436_v53  ;;  %1531 = vmatpush3.msra.mxu1 %v724_v16  ;;  %1562 = vmatprep.mubr.msk.f32.mxu1 %vm1907_vm5, %v1906_v15  ;;  %vm1448_vm14 = vmpackc.low %vm1909_vm13, %vm386_vm2  ;;  %p1831_p2 = por %p1830_p10, %p1829_p5 }
  0x78   : > { %1532 = vmatprep.subr.mxu1 %v1906_v15  ;;  %vm1451_vm2 = vmpackc.low %vm426_vm4, %vm1909_vm13 }
  0x79   : > { %615 = vmatpush1.bf16.msra.mxu0 %v1681_v60  ;;  %1533 = vmatpush3.msra.mxu1 %v723_v17  ;;  %p1832_p9 = pnand %p1831_p2, %p1825_p0 }
  0x7a   : > { %616 = vmatprep.subr.bf16.mxu0 %v1904_v1  ;;  %1534 = vmatprep.subr.mxu1 %v1906_v15 }
  0x7b   : > { %1535 = vmatpush3.msra.mxu1 %v722_v18 }
  0x7c   : > { %1536 = vmatprep.subr.mxu1 %v1906_v15 }
  0x7d   : > { %617 = vmatpush1.bf16.msra.mxu0 %v1682_v62  ;;  %1537 = vmatpush3.msra.mxu1 %v721_v19 }
  0x7e   : > { %618 = vmatprep.subr.bf16.mxu0 %v1904_v1  ;;  %1538 = vmatprep.subr.mxu1 %v1906_v15 }
  0x7f   : > { %1539 = vmatpush3.msra.mxu1 %v720_v20 }
  0x80   : > { %1540 = vmatprep.subr.mxu1 %v1906_v15 }
  0x81   : > { %619 = vmatpush1.bf16.msra.mxu0 %v1683_v63  ;;  %1541 = vmatpush3.msra.mxu1 %v719_v21 }
  0x82   : > { %620 = vmatprep.subr.bf16.mxu0 %v1904_v1  ;;  %1542 = vmatprep.subr.mxu1 %v1906_v15 }
  0x83   : > { %1543 = vmatpush3.msra.mxu1 %v718_v22 }
  0x84   : > { %1544 = vmatprep.subr.mxu1 %v1906_v15 }
  0x85   : > { %621 = vmatpush1.bf16.msra.mxu0 %v1684_v0  ;;  %1545 = vmatpush3.msra.mxu1 %v717_v23 }
  0x86   : > { %622 = vmatprep.subr.bf16.mxu0 %v1904_v1  ;;  %1546 = vmatprep.subr.mxu1 %v1906_v15 }
  0x87   : > { %1547 = vmatpush3.msra.mxu1 %v716_v24 }
  0x88   : > { %1548 = vmatprep.subr.mxu1 %v1906_v15 }
  0x89   : > { %623 = vmatpush1.bf16.msra.mxu0 %v1685_v3  ;;  %1549 = vmatpush3.msra.mxu1 %v715_v25 }
  0x8a   : > { %632 = vmatprep.subr.bf16.mxu0 %v1904_v1  ;;  %1550 = vmatprep.subr.mxu1 %v1906_v15 }
  0x8b   : > { %1551 = vmatpush3.msra.mxu1 %v714_v26 }
  0x8c   : > { %1552 = vmatprep.subr.mxu1 %v1906_v15 }
  0x8d   : > { %633 = vmatpush2.bf16.msra.mxu0 %v1686_v4  ;;  %1553 = vmatpush3.msra.mxu1 %v713_v27 }
  0x8e   : > { %634 = vmatprep.subr.bf16.mxu0 %v1904_v1  ;;  %1554 = vmatprep.subr.mxu1 %v1906_v15 }
  0x8f   : > { %1555 = vmatpush3.msra.mxu1 %v712_v28 }
  0x90   : > { %1556 = vmatprep.subr.mxu1 %v1906_v15 }
  0x91   : > { %635 = vmatpush2.bf16.msra.mxu0 %v1687_v5  ;;  %1557 = vmatpush3.msra.mxu1 %v711_v29 }
  0x92   : > { %636 = vmatprep.subr.bf16.mxu0 %v1904_v1  ;;  %1558 = vmatprep.subr.mxu1 %v1906_v15 }
  0x93   : > { %1559 = vmatpush3.msra.mxu1 %v710_v30  ;;  %v1690_v30 = vld [vmem:[#allocation8 + $0x78] sm:$0xff]  }
  0x94   : > { %1560 = vmatprep.subr.mxu1 %v1906_v15 }
  0x95   : > { %637 = vmatpush2.bf16.msra.mxu0 %v1688_v6  ;;  %1561 = vmatpush3.msra.mxu1 %v709_v31  ;;  %v1691_v31 = vld [vmem:[#allocation8 + $0x38] sm:$0xff]  }
  0x96   : > { %638 = vmatprep.subr.bf16.mxu0 %v1904_v1  ;;  %1478 = vmatprep.subr.bf16.mxu1 %v1690_v30 }
  0x99   : > { %639 = vmatpush2.bf16.msra.mxu0 %v1689_v7 }
  0xdd   : > { %v469_v8 = vpop.permute.xlu0 %468 }
  0xde   : > { %v479_v9 = vsel %vm476_vm1, %v452_v42, %v469_v8 }
  0xdf   : > { %641 = vmatmul.mubr.bf16.vlgmr.msra.gmra.mxu0 %v479_v9 }
  0xe0   : > { %1420 = vmatprep.mubr.msk.bf16.mxu0 %vm476_vm1, %v461_v46  ;;  %v473_v12 = vpop.permute.xlu1 %472 }
  0xe1   : > { %v471_v10 = vpop.permute.xlu0 %470  ;;  %v487_v13 = vsel %vm476_vm1, %v454_v54, %v473_v12 }
  0xe2   : > { %v483_v11 = vsel %vm476_vm1, %v453_v44, %v471_v10 }
  0xe4   : > { %v475_v1 = vpop.permute.xlu1 %474 }
  0xe5   : > { %v491_v14 = vsel %vm476_vm1, %v455_v59, %v475_v1 }
  0xe7   : > { %649 = vmatmul.mubr.bf16.gmra.mxu0 %v483_v11 }
  0xe8   : > { %1421 = vmatprep.mubr.msk.bf16.mxu0 %vm476_vm1, %v462_v50 }
  0xef   : > { %657 = vmatmul.mubr.bf16.gmra.mxu0 %v487_v13 }
  0xf0   : > { %1422 = vmatprep.mubr.msk.bf16.mxu0 %vm476_vm1, %v463_v61 }
  0xf7   : > { %665 = vmatmul.mubr.bf16.gmra.mxu0 %v491_v14 }
 0x19f   : > { %v642_v32 = vpop.f32.mrf.mxu0 }
 0x1a0   : > { %v2211_v42 = vadd.f32 %v1406_v38, %v642_v32  ;;  %v1692_v32 = vld [vmem:[#allocation8 + $0xb8] sm:$0xff]  }
 0x1a1   : > { %v644_v33 = vpop.f32.mrf.mxu0  ;;  %1565 = vmatprep.subr.bf16.mxu0 %v1692_v32 }
 0x1a2   : > { %v686_v48 = vmul.f32 %v2211_v42, %v2211_v42  ;;  %1566 = vmatpush3.bf16.msra.mxu0 %v1692_v32  ;;  %v1693_v33 = vld [vmem:[#allocation8 + $0x70] sm:$0xff]  }
 0x1a3   : > { %v645_v34 = vpop.f32.mrf.mxu0 }
 0x1a4   : > { %v2209_v40 = vadd.f32 %v1406_v38, %v645_v34  ;;  %v1694_v34 = vld [vmem:[#allocation8 + $0x30] sm:$0xff]  }
 0x1a5   : > { %v647_v35 = vpop.f32.mrf.mxu0 }
 0x1a6   : > { %v687_v45 = vmul.f32 %v2209_v40, %v2209_v40  ;;  %v673_v49 = vadd.f32 %v2209_v40, %v2211_v42  ;;  %v1695_v35 = vld [vmem:[#allocation8 + $0xb0] sm:$0xff]  }
 0x1a7   : > { %v650_v36 = vpop.f32.mrf.mxu0  ;;  %1567 = vmatprep.subr.bf16.mxu0 %v1695_v35 }
 0x1a8   : > { %v2213_v43 = vadd.f32 %v1406_v38, %v650_v36  ;;  %v694_v54 = vadd.f32 %v687_v45, %v686_v48  ;;  %1568 = vmatpush3.bf16.msra.mxu0 %v1695_v35  ;;  %v1696_v36 = vld [vmem:[#allocation8 + $0x68] sm:$0xff]   ;;  %v1702_v45 = vld [vmem:[#allocation8 + $0x58] sm:$0xff]  }
 0x1a9   : > { %v652_v37 = vpop.f32.mrf.mxu0  ;;  %v1704_v48 = vld [vmem:[#allocation8 + $0x98] sm:$0xff]  }
 0x1aa   : > { %v688_v50 = vmul.f32 %v2213_v43, %v2213_v43  ;;  %v674_v55 = vadd.f32 %v673_v49, %v2213_v43  ;;  %v1697_v37 = vld [vmem:[#allocation8 + $0x28] sm:$0xff]   ;;  %v1705_v49 = vld [vmem:[#allocation8 + $0x50] sm:$0xff]  }
 0x1ab   : > { %v653_v39 = vpop.f32.mrf.mxu0 }
 0x1ac   : > { %v2217_v46 = vadd.f32 %v1406_v38, %v653_v39  ;;  %v695_v59 = vadd.f32 %v694_v54, %v688_v50  ;;  %v1699_v39 = vld [vmem:[#allocation8 + $0x60] sm:$0xff]   ;;  %v1706_v50 = vld [vmem:[#allocation8 + $0x10] sm:$0xff]   ;;  %v1708_v54 = vld [vmem:[#allocation8 + $0x48] sm:$0xff]  }
 0x1ad   : > { %v655_v41 = vpop.f32.mrf.mxu0 }
 0x1ae   : > { %v689_v56 = vmul.f32 %v2217_v46, %v2217_v46  ;;  %v675_v60 = vadd.f32 %v674_v55, %v2217_v46  ;;  %v1700_v41 = vld [vmem:[#allocation8 + $0x20] sm:$0xff]   ;;  %v1710_v55 = vld [vmem:[#allocation8 + $0x88] sm:$0xff]  }
 0x1af   : > { %v658_v44 = vpop.f32.mrf.mxu0 }
 0x1b0   : > { %v2225_v51 = vadd.f32 %v1406_v38, %v658_v44  ;;  %v696_v63 = vadd.f32 %v695_v59, %v689_v56  ;;  %v1701_v44 = vld [vmem:[#allocation8 + $0xa0] sm:$0xff]   ;;  %v1709_v56 = vld [vmem:[#allocation8 + $0x8] sm:$0xff]  }
 0x1b1   : > { %v660_v47 = vpop.f32.mrf.mxu0  ;;  %v1712_v59 = vld [vmem:[#allocation8] sm:$0xff]  }
 0x1b2   : > { %v690_v61 = vmul.f32 %v2225_v51, %v2225_v51  ;;  %v676_v0 = vadd.f32 %v675_v60, %v2225_v51  ;;  %v1703_v47 = vld [vmem:[#allocation8 + $0x18] sm:$0xff]   ;;  %v1713_v60 = vld [vmem:[#allocation8 + $0x80] sm:$0xff]  }
 0x1b3   : > { %v661_v53 = vpop.f32.mrf.mxu0 }
 0x1b4   : > { %v2230_v57 = vadd.f32 %v1406_v38, %v661_v53  ;;  %v697_v6 = vadd.f32 %v696_v63, %v690_v61  ;;  %v1707_v53 = vld [vmem:[#allocation8 + $0x90] sm:$0xff]  }
 0x1b5   : > { %v663_v58 = vpop.f32.mrf.mxu0 }
 0x1b6   : > { %v691_v3 = vmul.f32 %v2230_v57, %v2230_v57  ;;  %v677_v7 = vadd.f32 %v676_v0, %v2230_v57  ;;  %v1711_v58 = vld [vmem:[#allocation8 + $0x40] sm:$0xff]  }
 0x1b7   : > { %v666_v62 = vpop.f32.mrf.mxu0 }
 0x1b8   : > { %v2238_v4 = vadd.f32 %v1406_v38, %v666_v62  ;;  %v698_v10 = vadd.f32 %v697_v6, %v691_v3 }
 0x1b9   : > { %v668_v5 = vpop.f32.mrf.mxu0 }
 0x1ba   : > { %v692_v8 = vmul.f32 %v2238_v4, %v2238_v4  ;;  %v678_v11 = vadd.f32 %v677_v7, %v2238_v4 }
 0x1bb   : > { %v669_v9 = vpop.f32.mrf.mxu0 }
 0x1bc   : > { %v2244_v12 = vadd.f32 %v1406_v38, %v669_v9  ;;  %v699_v1 = vadd.f32 %v698_v10, %v692_v8  ;;  %v1698_v38 = vld [vmem:[#allocation8 + $0xa8] sm:$0xff]   ;;  %v1908_v8 = vmov 1966171168  }
 0x1bd   : > { %v671_v13 = vpop.f32.mrf.mxu0  ;;  %1569 = vmatprep.subr.bf16.mxu0 %v1698_v38  ;;  %v807_v9 = vunpack.c.l.s4 %v1908_v8 }
 0x1be   : > { %v679_v14 = vadd.f32 %v678_v11, %v2244_v12  ;;  %v693_v15 = vmul.f32 %v2244_v12, %v2244_v12  ;;  %1570 = vmatpush3.bf16.msra.mxu0 %v1698_v38 }
 0x1bf   : > { %1571 = vmatprep.subr.bf16.mxu0 %v1701_v44  ;;  %v808_v10 = vunpack.c.0.s8 %v807_v9 }
 0x1c0   : > { %v680_v16 = vrot.slane %v679_v14, 4  ;;  %v700_v17 = vadd.f32 %v699_v1, %v693_v15  ;;  %v802_v15 = vld [vmem:[%s2377_s4] sm:$0x1] }
 0x1c1   : > { %v811_v11 = vsub.s32 %v808_v10, %v2124_v2 }
 0x1c2   : > { %v681_v18 = vadd.f32 %v680_v16, %v679_v14  ;;  %v701_v19 = vrot.slane %v700_v17, 4  ;;  %1572 = vmatpush3.bf16.msra.mxu0 %v1701_v44 }
 0x1c3   : > { %1573 = vmatprep.subr.bf16.mxu0 %v1704_v48 }
 0x1c4   : > { %v682_v20 = vrot.slane %v681_v18, 2  ;;  %v702_v21 = vadd.f32 %v701_v19, %v700_v17  ;;  %v829_v17 = vsub.s32 0, %v2124_v2  ;;  %v823_v19 = vld [vmem:[%s2378_s5] sm:$0x1] }
 0x1c6   : > { %v683_v22 = vadd.f32 %v682_v20, %v681_v18  ;;  %v703_v23 = vrot.slane %v702_v21, 2  ;;  %1574 = vmatpush3.bf16.msra.mxu0 %v1704_v48 }
 0x1c7   : > { %1575 = vmatprep.subr.bf16.mxu0 %v1707_v53 }
 0x1c8   : > { %v684_v24 = vrot.slane %v683_v22, 1  ;;  %v704_v25 = vadd.f32 %v703_v23, %v702_v21 }
 0x1ca   : > { %v705_v26 = vrot.slane %v704_v25, 1  ;;  %v685_v27 = vadd.f32 %v684_v24, %v683_v22  ;;  %1576 = vmatpush3.bf16.msra.mxu0 %v1707_v53 }
 0x1cb   : > { %1577 = vmatprep.subr.bf16.mxu0 %v1710_v55 }
 0x1cc   : > { %v706_v28 = vadd.f32 %v705_v26, %v704_v25 }
 0x1ce   : > { %v708_v29 = vsel %vm707_vm6, %v685_v27, %v706_v28  ;;  %1578 = vmatpush3.bf16.msra.mxu0 %v1710_v55 }
 0x1cf   : > { %1563 = vmatmul.mubr.f32.vlgmr.msra.gmra.mxu1 %v708_v29  ;;  %1579 = vmatprep.subr.bf16.mxu0 %v1713_v60 }
 0x1d0   : > { %1479 = vmatpush3.bf16.msra.mxu1 %v1691_v31 }
 0x1d1   : > { %1480 = vmatprep.subr.bf16.mxu1 %v1693_v33 }
 0x1d2   : > { %1580 = vmatpush3.bf16.msra.mxu0 %v1713_v60 }
 0x1d4   : > { %1481 = vmatpush3.bf16.msra.mxu1 %v1694_v34 }
 0x1d5   : > { %1482 = vmatprep.subr.bf16.mxu1 %v1696_v36 }
 0x1d8   : > { %1483 = vmatpush3.bf16.msra.mxu1 %v1697_v37 }
 0x1d9   : > { %1484 = vmatprep.subr.bf16.mxu1 %v1699_v39 }
 0x1dc   : > { %1485 = vmatpush3.bf16.msra.mxu1 %v1700_v41 }
 0x1dd   : > { %1486 = vmatprep.subr.bf16.mxu1 %v1702_v45 }
 0x1e0   : > { %1487 = vmatpush3.bf16.msra.mxu1 %v1703_v47 }
 0x1e1   : > { %1488 = vmatprep.subr.bf16.mxu1 %v1705_v49 }
 0x1e4   : > { %1489 = vmatpush3.bf16.msra.mxu1 %v1706_v50 }
 0x1e5   : > { %1490 = vmatprep.subr.bf16.mxu1 %v1708_v54 }
 0x1e8   : > { %1491 = vmatpush3.bf16.msra.mxu1 %v1709_v56 }
 0x1e9   : > { %1492 = vmatprep.subr.bf16.mxu1 %v1711_v58 }
 0x1ec   : > { %1493 = vmatpush3.bf16.msra.mxu1 %v1712_v59 }
 0x28f   : > { %v791_v61 = vpop.f32.mrf.mxu1 }
 0x290   : > { %v795_v62 = vmul.f32 0.001953125, %v791_v61 }
 0x291   : > { %v1564_v63 = vpop.f32.mrf.mxu1 }
 0x292   : > { %v796_v0 = vmul.f32 %v795_v62, %v795_v62 }
 0x294   : > { %v798_v3 = vrot.slane %v796_v0, 7 }
 0x296   : > { %v800_v5 = vsub.f32 %v795_v62, %v798_v3 }
 0x298   : > { %v801_v6 = vmax.f32 %v800_v5, 0.0 }
 0x29a   : > { %v803_v7 = vadd.f32 1e-05, %v801_v6 }
 0x29c   : > { %1714 = vrsqrt.f32 %v803_v7 }
 0x2a9   : > { %v1715_v13 = vpop.eup %1714 }
 0x2aa   : > { %v812_v1 = vrot.slane %v1715_v13, %v811_v11 }
 0x2ac   : > { %v813_v14 = vcombine.high %v812_v1, %v812_v1 }
 0x2ae   : > { %v820_v16 = vrot.slane %v813_v14, %v811_v11 }
 0x2b0   : > { %v822_v18 = vmul.f32 %v820_v16, %v802_v15 }
 0x2b2   : > { %v824_v20 = vmul.f32 %v822_v18, %v795_v62  ;;  %v830_v21 = vrot.slane %v822_v18, %v829_v17 }
 0x2b4   : > { %v825_v22 = vsub.f32 %v823_v19, %v824_v20  ;;  %v832_v23 = vmul.f32 %v830_v21, %v2211_v42  ;;  %v833_v25 = vmul.f32 %v830_v21, %v2209_v40  ;;  %v839_v26 = vmul.f32 %v830_v21, %v2244_v12 }
 0x2b5   : > { %v834_v27 = vmul.f32 %v830_v21, %v2213_v43  ;;  %v835_v28 = vmul.f32 %v830_v21, %v2217_v46  ;;  %v836_v29 = vmul.f32 %v830_v21, %v2225_v51  ;;  %v837_v30 = vmul.f32 %v830_v21, %v2230_v57 }
 0x2b6   : > { %v844_v24 = vrot.slane %v825_v22, %v829_v17  ;;  %v838_v31 = vmul.f32 %v830_v21, %v2238_v4 }
 0x2b8   : > { %v846_v32 = vadd.f32 %v844_v24, %v832_v23  ;;  %v847_v33 = vadd.f32 %v844_v24, %v833_v25  ;;  %v853_v34 = vadd.f32 %v844_v24, %v839_v26  ;;  %v848_v35 = vadd.f32 %v844_v24, %v834_v27 }
 0x2b9   : > { %v849_v42 = vadd.f32 %v844_v24, %v835_v28  ;;  %v850_v36 = vadd.f32 %v844_v24, %v836_v29  ;;  %v851_v37 = vadd.f32 %v844_v24, %v837_v30  ;;  %v852_v40 = vadd.f32 %v844_v24, %v838_v31 }
 0x2ba   : > { %vm854_vm7 = vcmp.gt.f32.partialorder %v846_v32, 0.0  ;;  %vm855_vm8 = vcmp.gt.f32.partialorder %v847_v33, 0.0  ;;  %v862_v12 = vmul.f32 0.01, %v846_v32  ;;  %v863_v43 = vmul.f32 0.01, %v847_v33 }
 0x2bb   : > { %vm861_vm9 = vcmp.gt.f32.partialorder %v853_v34, 0.0  ;;  %v869_v46 = vmul.f32 0.01, %v853_v34  ;;  %vm856_vm10 = vcmp.gt.f32.partialorder %v848_v35, 0.0  ;;  %v864_v51 = vmul.f32 0.01, %v848_v35 }
 0x2bc   : > { %v870_v38 = vsel %vm854_vm7, %v846_v32, %v862_v12  ;;  %v871_v57 = vsel %vm855_vm8, %v847_v33, %v863_v43  ;;  %vm857_vm11 = vcmp.gt.f32.partialorder %v849_v42, 0.0  ;;  %v865_v4 = vmul.f32 0.01, %v849_v42 }
 0x2bd   : > { %v878_v39 = vrot.slane %v870_v38, 7  ;;  %v879_v41 = vrot.slane %v871_v57, 7  ;;  %v902_v44 = vrot.slane %v870_v38, 1  ;;  %v903_v45 = vrot.slane %v871_v57, 1 }
 0x2be   : > { %v930_v47 = vpack.c.bf16 %v871_v57, %v870_v38  ;;  %v2265_v48 = vsel %vm861_vm9, %v853_v34, %v869_v46  ;;  %v872_v49 = vsel %vm856_vm10, %v848_v35, %v864_v51  ;;  %v873_v50 = vsel %vm857_vm11, %v849_v42, %v865_v4 }
 0x2bf   : > { %v885_v53 = vrot.slane %v2265_v48, 7  ;;  %v892_v54 = vsel %vm402_vm3, %v878_v39, %v879_v41  ;;  %v904_v55 = vrot.slane %v872_v49, 1  ;;  %v916_v56 = vsel %vm435_vm0, %v902_v44, %v903_v45 }
 0x2c0   : > { %1169 = vmatprep.mubr.bf16.mxu1 %v930_v47  ;;  %v881_v58 = vrot.slane %v873_v50, 7  ;;  %v905_v59 = vrot.slane %v873_v50, 1  ;;  %vm858_vm12 = vcmp.gt.f32.partialorder %v850_v36, 0.0  ;;  %v931_v62 = vpack.c.bf16 %v873_v50, %v872_v49 }
 0x2c1   : > { %v893_v60 = vsel %vm402_vm3, %v885_v53, %v878_v39  ;;  %v915_v61 = vsel %vm435_vm0, %v903_v45, %v904_v55  ;;  %v866_v63 = vmul.f32 0.01, %v850_v36  ;;  %vm859_vm15 = vcmp.gt.f32.partialorder %v851_v37, 0.0 }
 0x2c2   : > { %v1449_v0 = vpack.c.bf16 %v892_v54, %v893_v60  ;;  %v934_v3 = vpack.c.bf16 %v915_v61, %v916_v56  ;;  %vm860_vm1 = vcmp.gt.f32.partialorder %v852_v40, 0.0  ;;  %v867_v6 = vmul.f32 0.01, %v851_v37 }
 0x2c3   : > { %v874_v5 = vsel %vm858_vm12, %v850_v36, %v866_v63  ;;  %v868_v7 = vmul.f32 0.01, %v852_v40  ;;  %v880_v8 = vrot.slane %v872_v49, 7  ;;  %v914_v10 = vsel %vm435_vm0, %v904_v55, %v905_v59 }
 0x2c4   : > { %1450 = vmatmul.mubr.msk.bf16.vlgmr.msra.gmra.mxu1 %vm1448_vm14, %v1449_v0  ;;  %1581 = vmatprep.mubr.bf16.mxu0 %v934_v3  ;;  %v906_v9 = vrot.slane %v874_v5, 1  ;;  %v875_v11 = vsel %vm859_vm15, %v851_v37, %v867_v6  ;;  %v909_v21 = vrot.slane %v2265_v48, 1  ;;  %v882_v25 = vrot.slane %v874_v5, 7 }
 0x2c5   : > { %1177 = vmatprep.mubr.bf16.mxu1 %v931_v62  ;;  %v876_v13 = vsel %vm860_vm1, %v852_v40, %v868_v7  ;;  %v907_v14 = vrot.slane %v875_v11, 1  ;;  %v890_v17 = vsel %vm402_vm3, %v880_v8, %v881_v58  ;;  %v891_v18 = vsel %vm402_vm3, %v879_v41, %v880_v8  ;;  %v1423_v40 = vld [vmem:[%s2380_s7] ss:$0 sm:$0xff] }
 0x2c6   : > { %v913_v1 = vsel %vm435_vm0, %v905_v59, %v906_v9  ;;  %v908_v15 = vrot.slane %v876_v13, 1  ;;  %v927_v23 = vpack.c.bf16 %v890_v17, %v891_v18  ;;  %v932_v24 = vpack.c.bf16 %v875_v11, %v874_v5 }
 0x2c7   : > { %v935_v16 = vpack.c.bf16 %v913_v1, %v914_v10  ;;  %v912_v20 = vsel %vm435_vm0, %v906_v9, %v907_v14  ;;  %v883_v26 = vrot.slane %v875_v11, 7  ;;  %v917_v28 = vsel %vm435_vm0, %v909_v21, %v902_v44 }
 0x2c8   : > { %v911_v19 = vsel %vm435_vm0, %v907_v14, %v908_v15  ;;  %v910_v27 = vsel %vm435_vm0, %v908_v15, %v909_v21  ;;  %v889_v31 = vsel %vm402_vm3, %v881_v58, %v882_v25  ;;  %v933_v33 = vpack.c.bf16 %v2265_v48, %v876_v13 }
 0x2c9   : > { %1582 = vmatmul.mubr.bf16.vlgmr.msra.gmra.mxu0 %v935_v16  ;;  %v936_v22 = vpack.c.bf16 %v911_v19, %v912_v20  ;;  %v1452_v29 = vpack.c.bf16 %v917_v28, %v910_v27  ;;  %v888_v30 = vsel %vm402_vm3, %v882_v25, %v883_v26  ;;  %v884_v34 = vrot.slane %v876_v13, 7 }
 0x2ca   : > { %v928_v32 = vpack.c.bf16 %v888_v30, %v889_v31 }
 0x2cb   : > { %1585 = vmatprep.mubr.bf16.mxu0 %v936_v22  ;;  %v886_v35 = vsel %vm402_vm3, %v884_v34, %v885_v53  ;;  %v887_v52 = vsel %vm402_vm3, %v883_v26, %v884_v34 }
 0x2cc   : > { %1178 = vmatmul.mubr.bf16.gmra.mxu1 %v927_v23  ;;  %v929_v42 = vpack.c.bf16 %v886_v35, %v887_v52 }
 0x2cd   : > { %1185 = vmatprep.mubr.bf16.mxu1 %v932_v24 }
 0x2d1   : > { %1586 = vmatmul.mubr.msk.bf16.gmra.mxu0 %vm1451_vm2, %v1452_v29 }
 0x2d4   : > { %1186 = vmatmul.mubr.bf16.gmra.mxu1 %v928_v32 }
 0x2d5   : > { %1193 = vmatprep.mubr.bf16.mxu1 %v933_v33 }
 0x2dc   : > { %1194 = vmatmul.mubr.bf16.gmra.mxu1 %v929_v42 }
 0x384   : > { %v1494_v36 = vpop.f32.mrf.mxu1 }
 0x386   : > { %v1495_v37 = vpop.f32.mrf.mxu1 }
 0x387   : > { %v1496_v12 = vadd.f32 %v1495_v37, %v1494_v36 }
 0x388   : > { %v1497_v43 = vpop.f32.mrf.mxu1 }
 0x389   : > { %v1583_v46 = vpop.f32.mrf.mxu0  ;;  %v1172_v51 = vadd.f32 %v1496_v12, %v1423_v40 }
 0x38a   : > { %v1498_v38 = vpop.f32.mrf.mxu1 }
 0x38b   : > { %v1236_v57 = vpop.f32.mrf.mxu0  ;;  %v1499_v4 = vadd.f32 %v1498_v38, %v1497_v43 }
 0x38c   : > { %v1237_v39 = vadd.f32 %v1236_v57, %v1172_v51  ;;  %v1500_v41 = vpop.f32.mrf.mxu1 }
 0x38d   : > { %v1584_v2 = vpop.f32.mrf.mxu0  ;;  %v1175_v44 = vadd.f32 %v1499_v4, %v1423_v40 }
 0x38e   : > { %1267 = vst [vmem:[%s2313_s26] sm:$0xff] %v1237_v39  ;;  %v1501_v45 = vpop.f32.mrf.mxu1 }
 0x38f   : > { %v1239_v47 = vpop.f32.mrf.mxu0  ;;  %v1502_v48 = vadd.f32 %v1501_v45, %v1500_v41 }
 0x390   : > { %v1240_v49 = vadd.f32 %v1239_v47, %v1175_v44  ;;  %v1503_v50 = vpop.f32.mrf.mxu1 }
 0x391   : > { %v1180_v53 = vadd.f32 %v1502_v48, %v1423_v40  ;;  %v1587_v54 = vpop.f32.mrf.mxu0 }
 0x392   : > { %1268 = vst [vmem:[%s2313_s26 + $0x8] sm:$0xff] %v1240_v49  ;;  %v1504_v55 = vpop.f32.mrf.mxu1 }
 0x393   : > { %v1245_v56 = vadd.f32 %v1583_v46, %v1180_v53  ;;  %v1505_v58 = vadd.f32 %v1504_v55, %v1503_v50  ;;  %v1252_v61 = vpop.f32.mrf.mxu0 }
 0x394   : > { %v1506_v59 = vpop.f32.mrf.mxu1 }
 0x395   : > { %1269 = vst [vmem:[%s2313_s26 + $0x10] sm:$0xff] %v1245_v56  ;;  %v1183_v60 = vadd.f32 %v1505_v58, %v1423_v40  ;;  %v1588_v6 = vpop.f32.mrf.mxu0 }
 0x396   : > { %v1507_v62 = vpop.f32.mrf.mxu1 }
 0x397   : > { %v1248_v63 = vadd.f32 %v1584_v2, %v1183_v60  ;;  %v1508_v0 = vadd.f32 %v1507_v62, %v1506_v59  ;;  %v1255_v13 = vpop.f32.mrf.mxu0 }
 0x398   : > { %v1509_v3 = vpop.f32.mrf.mxu1 }
 0x399   : > { %1270 = vst [vmem:[%s2313_s26 + $0x18] sm:$0xff] %v1248_v63  ;;  %v1188_v5 = vadd.f32 %v1508_v0, %v1423_v40 }
 0x39a   : > { %v1510_v7 = vpop.f32.mrf.mxu1 }
 0x39b   : > { %v1253_v8 = vadd.f32 %v1252_v61, %v1188_v5  ;;  %v1511_v9 = vadd.f32 %v1510_v7, %v1509_v3 }
 0x39c   : > { %v1512_v10 = vpop.f32.mrf.mxu1 }
 0x39d   : > { %1271 = vst [vmem:[%s2313_s26 + $0x20] sm:$0xff] %v1253_v8  ;;  %v1191_v11 = vadd.f32 %v1511_v9, %v1423_v40 }
 0x39e   : > { %v1513_v1 = vpop.f32.mrf.mxu1 }
 0x39f   : > { %v1256_v14 = vadd.f32 %v1255_v13, %v1191_v11  ;;  %v1514_v15 = vadd.f32 %v1513_v1, %v1512_v10 }
 0x3a0   : > { %v1515_v16 = vpop.f32.mrf.mxu1 }
 0x3a1   : > { %1272 = vst [vmem:[%s2313_s26 + $0x28] sm:$0xff] %v1256_v14  ;;  %v1196_v17 = vadd.f32 %v1514_v15, %v1423_v40 }
 0x3a2   : > { %v1516_v18 = vpop.f32.mrf.mxu1 }
 0x3a3   : > { %v1261_v19 = vadd.f32 %v1587_v54, %v1196_v17  ;;  %v1517_v20 = vadd.f32 %v1516_v18, %v1515_v16 }
 0x3a5   : > { %1273 = vst [vmem:[%s2313_s26 + $0x30] sm:$0xff] %v1261_v19  ;;  %v1199_v21 = vadd.f32 %v1517_v20, %v1423_v40 }
 0x3a7   : > { %v1264_v22 = vadd.f32 %v1588_v6, %v1199_v21 }
 0x3a9   : > { %1274 = vst [vmem:[%s2313_s26 + $0x38] sm:$0xff] %v1264_v22 }
 0x3aa   : > { %1835 = shalt.err (!%p1832_p9)
}
 0x3ab   : > { %s1836_s23 = scalar_lea.hbm %s2329_s11, 1024  ;;  %s1840_s25 = scalar_lea.hbm %s2381_s8, 2048 }
 0x3ac   : > { %p1837_p1 = scmp.ne.s32.totalorder %s2329_s11, %s1836_s23  ;;  %p1841_p8 = scmp.lt.s32.totalorder %s2329_s11, %s2381_s8 }
 0x3ad   : > { %p1842_p3 = scmp.lt.s32.totalorder %s1840_s25, %s1836_s23 }
 0x3ae   : > { %p1838_p4 = pnand %p1837_p1, %p2406_p12 }
 0x3af   : > { %p1843_p11 = por %p1842_p3, %p1841_p8 }
 0x3b0   : > { %p1839_p6 = pneg %p1838_p4 }
 0x3b2   : > { %p1844_p7 = pnand %p1843_p11, %p1839_p6 }
 0x3b4   : > { %1847 = shalt.err (!%p1844_p7)
}
 0x3b5   : > { %s1911_s18 = smov 128   ;;  %s1912_s24 = smov 8  }
 0x3b6   : > { %1603 = dma.vmem_to_hbm [thread:$0]  (%p2406_p12), %s2323_s22, 1024, %s2329_s11, %s1276_s13, %s1911_s18, %s1911_s18, %s1912_s24  }
 0x3b7 PF: > { %s1304_s20 = sand.u32 1, %s1882_s27   ;;  %p2407_p13 = scmp.ne.s32.totalorder %s2391_s12, 0 }
 0x3b8   : > { %p2408_p0 = scmp.ge.s32.totalorder %s1894_s30, 2  ;;  %s1305_s9 = scalar_lea.sflag [#allocation4], %s1304_s20 }
 0x3ba   : > { %p1620_p5 = pnand %p2408_p0, %p2407_p13 }
 0x3bc   : > { %p1621_p10 = pneg %p1620_p5 }
 0x3be   : > { %1877 = dma.done.wait (%p1621_p10), %s1305_s9, 1024  }
 0x3bf   : > { %1879 = vsyncadd (%p1621_p10), %s1305_s9, 4294966272  ;;  %p23_p2 = scmp.ge.s32.totalorder %s2036_s19, 4   ;;  %s2409_s27 = smov %s1886_s28 }
 0x3c0   : > { %s2410_s28 = smov %s1890_s29  ;;  %s2411_s29 = smov %s2057_s10 }
 0x3c1   : > { %s2412_s30 = smov %s2036_s19  ;;  %25 = sbr.rel (!%p23_p2) target bundleno = 10 (0xa), region = 109 }
 0x3c6   :  { %1310 = vsyncpa [#allocation3], 1 }
 0x3c7   :  { %1312 = vsyncpa [#allocation3 + $0x1], 1 }
 0x3c8   :  { %1313 = vsyncpa [#allocation6], 1 }
 0x3c9   :  { %1314 = vsyncpa [#allocation9], 1 }
 0x3ca   :  { %1315 = vsyncpa [#allocation4], 1 }
 0x3cb   :  { %1317 = vsyncpa [#allocation4 + $0x1], 1 }

</bundles_post_ra>
